<compile_context>
chip_gen: v5e
topology: v5e:2x2
jax: 0.10.0
libtpu: 0.0.40
codegen_flags: <defaults>
</compile_context>

<pallas_src>
import functools

import jax
import jax.numpy as jnp
import numpy as np
from jax.experimental import pallas as pl
from jax.experimental.pallas import tpu as pltpu


def _round_up(x, m):
    return ((x + m - 1) // m) * m


def _masked_recon_loss_kernel(recon_ref, target_ref, side_ref,
                              lb_ref, part_ref, *, adim, tdim, vdim):
    f32 = jnp.float32

    # ---- shared squared error (computed once, f32 accumulation) -----------
    diff = recon_ref[...].astype(f32) - target_ref[...].astype(f32)
    d2 = diff * diff                                        # [T, D]
    tile_n, dim = d2.shape

    side = side_ref[...]                                    # [T, 5]
    mask = side[:, 0:3]                                     # modality flags
    ue = side[:, 3:4]                                       # umask.T order (batch path)
    us = side[:, 4:5]                                       # raw flatten order (scalar path)

    # Modality/mean matrix M[d, m] = (d in segment m) / dim_m.  Static given
    # (adim, tdim, vdim); built from tiny 2-D iotas (no extra DMA'd input).
    feat = jax.lax.broadcasted_iota(jnp.int32, (dim, 3), 0)
    mcol = jax.lax.broadcasted_iota(jnp.int32, (dim, 3), 1)
    in_a = feat < adim
    in_l = (feat >= adim) & (feat < adim + tdim)
    in_v = feat >= (adim + tdim)
    M = (((mcol == 0) & in_a).astype(f32) * (1.0 / adim)
         + ((mcol == 1) & in_l).astype(f32) * (1.0 / tdim)
         + ((mcol == 2) & in_v).astype(f32) * (1.0 / vdim))

    # P[i, m] = mean over modality-m features of d2[i, :] (one MXU matmul,
    # folds the 1/dim_m normalisation; shared by both loss paths).
    P = jnp.dot(d2, M, preferred_element_type=f32,
                precision=jax.lax.Precision.HIGHEST)        # [T, 3]

    # ---- per-(seq,batch) loss (MaskedBatchReconLoss) -----------------------
    # (r*u - t*u)^2 == d2 * u^2, so u^2 folds into the per-row weight.
    miss = (mask == 0.0).astype(f32)                        # PyTorch: (mask == 0)
    wb = miss * (ue * ue) * (1.0 / 3.0)                     # [T, 3]
    # Lane-dense per-row result: row[0, i] = sum_m P[i, m] * wb[i, m].
    # dot_general contracting the last dims == ones @ (P*wb).T; the MXU does
    # the sublane->lane transpose for us (no XLU relayout, no vst.msk column).
    ones_row = jnp.ones((1, 3), f32)
    lb_row = jax.lax.dot_general(
        ones_row, P * wb, (((1,), (1,)), ((), ())),
        preferred_element_type=f32,
        precision=jax.lax.Precision.HIGHEST)                # [1, T]
    lb_ref[0] = lb_row

    # ---- scalar loss: per-tile partials (reduced in the wrapper) -----------
    ws = (1.0 - mask) * (us * us)                           # PyTorch: -(mask - 1)
    num = jnp.sum(P * ws)                                   # partial numerator
    sus = jnp.sum(us)                                       # partial sum(umask)
    lane = jax.lax.broadcasted_iota(jnp.int32, (1, part_ref.shape[2]), 1)
    part_ref[0] = (jnp.where(lane == 0, num, 0.0)
                   + jnp.where(lane == 1, sus, 0.0))


@functools.partial(jax.jit,
                   static_argnames=("adim", "tdim", "vdim", "tile_n_max"))
def masked_recon_loss(recon, target, mask, umask, *, adim, tdim, vdim,
                      tile_n_max=1024):
    """Returns (loss_recon scalar, loss_batch [batch, seqlen])."""
    S, B, D = recon.shape
    assert D == adim + tdim + vdim
    N = S * B

    # Layout plumbing only (contiguous reshapes + one small concat).
    recon2 = recon.reshape(N, D)
    target2 = target.reshape(N, D)
    mask2 = mask.astype(jnp.float32).reshape(N, 3)
    umask_f = umask.astype(jnp.float32)
    ue = umask_f.T.reshape(N, 1)   # umask.permute(1,0): aligned with (s,b) rows
    us = umask_f.reshape(N, 1)     # raw flatten: intentional PyTorch-order mismatch
    side = jnp.concatenate([mask2, ue, us], axis=1)         # [N, 5]

    tile_n = min(_round_up(tile_n_max, 8), _round_up(N, 8))
    n_pad = _round_up(N, tile_n)
    num_tiles = n_pad // tile_n
    if n_pad != N:
        pad = n_pad - N
        # Zero padding: d2 = 0 and us = 0 there, so padded rows contribute 0
        # to every output; loss_batch padding is sliced off below.
        recon2 = jnp.pad(recon2, ((0, pad), (0, 0)))
        target2 = jnp.pad(target2, ((0, pad), (0, 0)))
        side = jnp.pad(side, ((0, pad), (0, 0)))

    kernel = functools.partial(_masked_recon_loss_kernel,
                               adim=adim, tdim=tdim, vdim=vdim)

    lb, parts = pl.pallas_call(
        kernel,
        grid=(num_tiles,),
        in_specs=[
            # If xprof shows exposed DMA (likely only v5e + f32 inputs), add
            # pipeline_mode=pl.Buffered(3) to these two specs.
            pl.BlockSpec((tile_n, D), lambda i: (i, 0)),
            pl.BlockSpec((tile_n, D), lambda i: (i, 0)),
            pl.BlockSpec((tile_n, 5), lambda i: (i, 0)),
        ],
        out_specs=(
            # Lane-dense per-tile rows of loss_batch.
            pl.BlockSpec((1, 1, tile_n), lambda i: (i, 0, 0)),
            # Per-tile scalar partials: lane 0 = numerator, lane 1 = sum(us).
            pl.BlockSpec((1, 1, 128), lambda i: (i, 0, 0)),
        ),
        out_shape=(
            jax.ShapeDtypeStruct((num_tiles, 1, tile_n), jnp.float32),
            jax.ShapeDtypeStruct((num_tiles, 1, 128), jnp.float32),
        ),
        compiler_params=pltpu.CompilerParams(
            dimension_semantics=("parallel",)),
    )(recon2, target2, side)

    loss_batch = lb.reshape(n_pad)[:N].reshape(S, B).T      # [B, S]
    loss_recon = jnp.sum(parts[:, 0, 0]) / jnp.sum(parts[:, 0, 1])
    return loss_recon, loss_batch


def _reference(recon, target, mask, umask, adim, tdim, vdim):
    """Pure-JAX transliteration of the PyTorch module (ground truth)."""
    S, B, D = recon.shape
    ue = umask.T[:, :, None]

    def bterm(lo, hi, mi):
        se = (recon[:, :, lo:hi] * ue - target[:, :, lo:hi] * ue) ** 2
        miss = (mask[:, :, mi] == 0).astype(jnp.float32)
        return (se * miss[:, :, None]).mean(-1)

    loss_batch = ((bterm(0, adim, 0) + bterm(adim, adim + tdim, 1)
                   + bterm(adim + tdim, D, 2)) / 3.0).T

    r2 = recon.reshape(-1, D)
    t2 = target.reshape(-1, D)
    m2 = mask.reshape(-1, 3)
    u2 = umask.reshape(-1, 1)

    def sterm(lo, hi, mi, dim):
        se = (r2[:, lo:hi] * u2 - t2[:, lo:hi] * u2) ** 2
        w = -1.0 * (m2[:, mi:mi + 1] - 1.0)
        return jnp.sum(se * w) / dim

    loss = (sterm(0, adim, 0, adim) + sterm(adim, adim + tdim, 1, tdim)
            + sterm(adim + tdim, D, 2, vdim)) / jnp.sum(u2)
    return loss, loss_batch


if __name__ == "__main__":
    adim, tdim, vdim = 16, 12, 20
    D = adim + tdim + vdim

    def run_case(key, S, B, tile_n_max):
        k1, k2, k3, k4 = jax.random.split(key, 4)
        recon = jax.random.normal(k1, (S, B, D), dtype=jnp.float32)
        target = jax.random.normal(k2, (S, B, D), dtype=jnp.float32)
        mask = jax.random.bernoulli(k3, 0.5, (S, B, 3)).astype(jnp.float32)
        umask = jax.random.bernoulli(k4, 0.7, (B, S)).astype(jnp.float32)

        loss_recon, loss_batch = masked_recon_loss(
            recon, target, mask, umask,
            adim=adim, tdim=tdim, vdim=vdim, tile_n_max=tile_n_max)
        jax.block_until_ready((loss_recon, loss_batch))

        ref_loss, ref_batch = _reference(recon, target, mask, umask,
                                         adim, tdim, vdim)
        np.testing.assert_allclose(np.asarray(loss_recon), np.asarray(ref_loss),
                                   rtol=1e-3, atol=1e-5)
        np.testing.assert_allclose(np.asarray(loss_batch), np.asarray(ref_batch),
                                   rtol=1e-3, atol=1e-5)

    key = jax.random.PRNGKey(0)
    ka, kb = jax.random.split(key)
    run_case(ka, S=8, B=2, tile_n_max=1024)    # single tile
    run_case(kb, S=100, B=3, tile_n_max=128)   # multi-tile grid + row padding

    print("KERNEL_OK")
</pallas_src>

<mosaic_0001>
module attributes {stable_mosaic.version = 11 : i64} {
  func.func @_masked_recon_loss_kernel(%arg0: i32, %arg1: memref<16x48xf32, #tpu.memory_space<vmem>>, %arg2: memref<16x48xf32, #tpu.memory_space<vmem>>, %arg3: memref<16x5xf32, #tpu.memory_space<vmem>>, %arg4: memref<1x1x16xf32, #tpu.memory_space<vmem>>, %arg5: memref<1x1x128xf32, #tpu.memory_space<vmem>>) attributes {dimension_semantics = [#tpu.dimension_semantics<parallel>], iteration_bounds = array<i64: 1>, scalar_prefetch = 0 : i64, scratch_operands = 0 : i64, tpu.core_type = #tpu.core_type<tc>, window_params = [{transform_indices = @transform_0, window_bounds = array<i64: 16, 48>}, {transform_indices = @transform_1, window_bounds = array<i64: 16, 48>}, {transform_indices = @transform_2, window_bounds = array<i64: 16, 5>}, {transform_indices = @transform_3, window_bounds = array<i64: 1, 1, 16>}, {transform_indices = @transform_4, window_bounds = array<i64: 1, 1, 128>}]} {
    %c0 = arith.constant 0 : index
    %c0_0 = arith.constant 0 : index
    %0 = vector.load %arg1[%c0, %c0_0] : memref<16x48xf32, #tpu.memory_space<vmem>>, vector<16x48xf32>
    %c0_1 = arith.constant 0 : index
    %c0_2 = arith.constant 0 : index
    %1 = vector.load %arg2[%c0_1, %c0_2] : memref<16x48xf32, #tpu.memory_space<vmem>>, vector<16x48xf32>
    %2 = arith.subf %0, %1 : vector<16x48xf32>
    %3 = arith.mulf %2, %2 : vector<16x48xf32>
    %c0_3 = arith.constant 0 : index
    %c0_4 = arith.constant 0 : index
    %4 = vector.load %arg3[%c0_3, %c0_4] : memref<16x5xf32, #tpu.memory_space<vmem>>, vector<16x5xf32>
    %5 = vector.extract_strided_slice %4 {offsets = [0, 0], sizes = [16, 3], strides = [1, 1]} : vector<16x5xf32> to vector<16x3xf32>
    %6 = vector.extract_strided_slice %4 {offsets = [0, 3], sizes = [16, 1], strides = [1, 1]} : vector<16x5xf32> to vector<16x1xf32>
    %7 = vector.extract_strided_slice %4 {offsets = [0, 4], sizes = [16, 1], strides = [1, 1]} : vector<16x5xf32> to vector<16x1xf32>
    %8 = tpu.iota {dimensions = array<i32: 0>} : vector<48x3xi32>
    %9 = tpu.iota {dimensions = array<i32: 1>} : vector<48x3xi32>
    %c16_i32 = arith.constant 16 : i32
    %10 = vector.broadcast %c16_i32 : i32 to vector<48x3xi32>
    %11 = arith.cmpi slt, %8, %10 : vector<48x3xi32>
    %c16_i32_5 = arith.constant 16 : i32
    %12 = vector.broadcast %c16_i32_5 : i32 to vector<48x3xi32>
    %13 = arith.cmpi sge, %8, %12 : vector<48x3xi32>
    %c28_i32 = arith.constant 28 : i32
    %14 = vector.broadcast %c28_i32 : i32 to vector<48x3xi32>
    %15 = arith.cmpi slt, %8, %14 : vector<48x3xi32>
    %16 = arith.andi %13, %15 : vector<48x3xi1>
    %c28_i32_6 = arith.constant 28 : i32
    %17 = vector.broadcast %c28_i32_6 : i32 to vector<48x3xi32>
    %18 = arith.cmpi sge, %8, %17 : vector<48x3xi32>
    %c0_i32 = arith.constant 0 : i32
    %19 = vector.broadcast %c0_i32 : i32 to vector<48x3xi32>
    %20 = arith.cmpi eq, %9, %19 : vector<48x3xi32>
    %21 = arith.andi %20, %11 : vector<48x3xi1>
    %22 = arith.extui %21 : vector<48x3xi1> to vector<48x3xi32>
    %23 = arith.sitofp %22 : vector<48x3xi32> to vector<48x3xf32>
    %cst = arith.constant 6.250000e-02 : f32
    %24 = vector.broadcast %cst : f32 to vector<48x3xf32>
    %25 = arith.mulf %23, %24 : vector<48x3xf32>
    %c1_i32 = arith.constant 1 : i32
    %26 = vector.broadcast %c1_i32 : i32 to vector<48x3xi32>
    %27 = arith.cmpi eq, %9, %26 : vector<48x3xi32>
    %28 = arith.andi %27, %16 : vector<48x3xi1>
    %29 = arith.extui %28 : vector<48x3xi1> to vector<48x3xi32>
    %30 = arith.sitofp %29 : vector<48x3xi32> to vector<48x3xf32>
    %cst_7 = arith.constant 0.0833333358 : f32
    %31 = vector.broadcast %cst_7 : f32 to vector<48x3xf32>
    %32 = arith.mulf %30, %31 : vector<48x3xf32>
    %33 = arith.addf %25, %32 : vector<48x3xf32>
    %c2_i32 = arith.constant 2 : i32
    %34 = vector.broadcast %c2_i32 : i32 to vector<48x3xi32>
    %35 = arith.cmpi eq, %9, %34 : vector<48x3xi32>
    %36 = arith.andi %35, %18 : vector<48x3xi1>
    %37 = arith.extui %36 : vector<48x3xi1> to vector<48x3xi32>
    %38 = arith.sitofp %37 : vector<48x3xi32> to vector<48x3xf32>
    %cst_8 = arith.constant 5.000000e-02 : f32
    %39 = vector.broadcast %cst_8 : f32 to vector<48x3xf32>
    %40 = arith.mulf %38, %39 : vector<48x3xf32>
    %41 = arith.addf %33, %40 : vector<48x3xf32>
    %cst_9 = arith.constant dense<0.000000e+00> : vector<16x3xf32>
    %42 = tpu.matmul %3, %41, %cst_9 {dimension_numbers = #tpu.dot_dimension_numbers<[1], [0], [0], [1], [0, 0, 1, 1], [], []>, precision = #tpu.contract_precision<fp32>} : vector<16x48xf32>, vector<48x3xf32>, vector<16x3xf32> -> vector<16x3xf32>
    %cst_10 = arith.constant 0.000000e+00 : f32
    %43 = vector.broadcast %cst_10 : f32 to vector<16x3xf32>
    %44 = arith.cmpf oeq, %5, %43 : vector<16x3xf32>
    %45 = arith.extui %44 : vector<16x3xi1> to vector<16x3xi32>
    %46 = arith.sitofp %45 : vector<16x3xi32> to vector<16x3xf32>
    %47 = arith.mulf %6, %6 : vector<16x1xf32>
    %48 = vector.broadcast %47 : vector<16x1xf32> to vector<16x3xf32>
    %49 = arith.mulf %46, %48 : vector<16x3xf32>
    %cst_11 = arith.constant 0.333333343 : f32
    %50 = vector.broadcast %cst_11 : f32 to vector<16x3xf32>
    %51 = arith.mulf %49, %50 : vector<16x3xf32>
    %cst_12 = arith.constant 1.000000e+00 : f32
    %52 = vector.broadcast %cst_12 : f32 to vector<1x3xf32>
    %53 = arith.mulf %42, %51 : vector<16x3xf32>
    %cst_13 = arith.constant dense<0.000000e+00> : vector<1x16xf32>
    %54 = tpu.matmul %52, %53, %cst_13 {dimension_numbers = #tpu.dot_dimension_numbers<[1], [1], [0], [0], [0, 0, 1, 0], [], []>, precision = #tpu.contract_precision<fp32>} : vector<1x3xf32>, vector<16x3xf32>, vector<1x16xf32> -> vector<1x16xf32>
    %c0_14 = arith.constant 0 : index
    %c0_15 = arith.constant 0 : index
    %c0_16 = arith.constant 0 : index
    %55 = vector.load %arg4[%c0_14, %c0_15, %c0_16] : memref<1x1x16xf32, #tpu.memory_space<vmem>>, vector<1x1x16xf32>
    %56 = vector.shape_cast %55 : vector<1x1x16xf32> to vector<1x16xf32>
    %57 = vector.shape_cast %54 : vector<1x16xf32> to vector<1x1x16xf32>
    tpu.vector_store %arg4[%c0_14, %c0_15, %c0_16], %57 {strides = array<i32>} : memref<1x1x16xf32, #tpu.memory_space<vmem>>, vector<1x1x16xf32>,
    %cst_17 = arith.constant 1.000000e+00 : f32
    %58 = vector.broadcast %cst_17 : f32 to vector<16x3xf32>
    %59 = arith.subf %58, %5 : vector<16x3xf32>
    %60 = arith.mulf %7, %7 : vector<16x1xf32>
    %61 = vector.broadcast %60 : vector<16x1xf32> to vector<16x3xf32>
    %62 = arith.mulf %59, %61 : vector<16x3xf32>
    %63 = arith.mulf %42, %62 : vector<16x3xf32>
    %64 = vector.shape_cast %63 : vector<16x3xf32> to vector<1x16x3xf32>
    %cst_18 = arith.constant dense<0.000000e+00> : vector<1xf32>
    %65 = vector.multi_reduction <add>, %64, %cst_18 [1, 2] : vector<1x16x3xf32> to vector<1xf32>
    %66 = vector.shape_cast %65 : vector<1xf32> to vector<1x1x1xf32>
    %67 = vector.extract %66[0, 0, 0] : f32 from vector<1x1x1xf32>
    %68 = vector.shape_cast %7 : vector<16x1xf32> to vector<1x16x1xf32>
    %cst_19 = arith.constant dense<0.000000e+00> : vector<1xf32>
    %69 = vector.multi_reduction <add>, %68, %cst_19 [1, 2] : vector<1x16x1xf32> to vector<1xf32>
    %70 = vector.shape_cast %69 : vector<1xf32> to vector<1x1x1xf32>
    %71 = vector.extract %70[0, 0, 0] : f32 from vector<1x1x1xf32>
    %72 = tpu.iota {dimensions = array<i32: 1>} : vector<1x128xi32>
    %c0_i32_20 = arith.constant 0 : i32
    %73 = vector.broadcast %c0_i32_20 : i32 to vector<1x128xi32>
    %74 = arith.cmpi eq, %72, %73 : vector<1x128xi32>
    %cst_21 = arith.constant 0.000000e+00 : f32
    %75 = vector.broadcast %67 : f32 to vector<1x128xf32>
    %76 = vector.broadcast %cst_21 : f32 to vector<1x128xf32>
    %77 = arith.select %74, %75, %76 : vector<1x128xi1>, vector<1x128xf32>
    %c1_i32_22 = arith.constant 1 : i32
    %78 = vector.broadcast %c1_i32_22 : i32 to vector<1x128xi32>
    %79 = arith.cmpi eq, %72, %78 : vector<1x128xi32>
    %cst_23 = arith.constant 0.000000e+00 : f32
    %80 = vector.broadcast %71 : f32 to vector<1x128xf32>
    %81 = vector.broadcast %cst_23 : f32 to vector<1x128xf32>
    %82 = arith.select %79, %80, %81 : vector<1x128xi1>, vector<1x128xf32>
    %83 = arith.addf %77, %82 : vector<1x128xf32>
    %c0_24 = arith.constant 0 : index
    %c0_25 = arith.constant 0 : index
    %c0_26 = arith.constant 0 : index
    %84 = vector.load %arg5[%c0_24, %c0_25, %c0_26] : memref<1x1x128xf32, #tpu.memory_space<vmem>>, vector<1x1x128xf32>
    %85 = vector.shape_cast %84 : vector<1x1x128xf32> to vector<1x128xf32>
    %86 = vector.shape_cast %83 : vector<1x128xf32> to vector<1x1x128xf32>
    tpu.vector_store %arg5[%c0_24, %c0_25, %c0_26], %86 {strides = array<i32>} : memref<1x1x128xf32, #tpu.memory_space<vmem>>, vector<1x1x128xf32>,
    return
  }
  func.func @transform_0(%arg0: i32) -> (i32, i32) {
    %c0_i32 = arith.constant 0 : i32
    %c0_i32_0 = arith.constant 0 : i32
    return %arg0, %c0_i32 : i32, i32
  }
  func.func @transform_1(%arg0: i32) -> (i32, i32) {
    %c0_i32 = arith.constant 0 : i32
    %c0_i32_0 = arith.constant 0 : i32
    return %arg0, %c0_i32 : i32, i32
  }
  func.func @transform_2(%arg0: i32) -> (i32, i32) {
    %c0_i32 = arith.constant 0 : i32
    %c0_i32_0 = arith.constant 0 : i32
    return %arg0, %c0_i32 : i32, i32
  }
  func.func @transform_3(%arg0: i32) -> (i32, i32, i32) {
    %c0_i32 = arith.constant 0 : i32
    %c0_i32_0 = arith.constant 0 : i32
    %c0_i32_1 = arith.constant 0 : i32
    return %arg0, %c0_i32, %c0_i32_0 : i32, i32, i32
  }
  func.func @transform_4(%arg0: i32) -> (i32, i32, i32) {
    %c0_i32 = arith.constant 0 : i32
    %c0_i32_0 = arith.constant 0 : i32
    %c0_i32_1 = arith.constant 0 : i32
    return %arg0, %c0_i32, %c0_i32_0 : i32, i32, i32
  }
}

</mosaic_0001>

<bundles_post_ra>
// kernel: masked_recon_loss.1
= control target key start
LH: loop header
LB: loop body
LE: loop exit
PB: predicated region body
PF: predicated region fallthrough
CT: control target
= control target key end

     0   :  { %v26_v0 = vlaneseq  ;;  %vm152_vm0 = vcmask 392192   ;;  %v682_v10 = vmov 0.0   ;;  %v683_v37 = vmov 3   ;;  %s828_s0 = inlined_call_operand.vmem [shape: f32[16,48], index: 0, kind: input, shape index: {}]   ;;  %s829_s1 = inlined_call_operand.vmem [shape: f32[16,48], index: 1, kind: input, shape index: {}]   ;;  %s830_s2 = inlined_call_operand.vmem [shape: f32[16,5], index: 2, kind: input, shape index: {}]   ;;  %s831_s3 = inlined_call_operand.vmem [shape: f32[1,1,16], index: 3, kind: output, shape index: {0}]   ;;  %s832_s4 = inlined_call_operand.vmem [shape: f32[1,1,128], index: 4, kind: output, shape index: {1}]  }
   0x1   :  { %v16_v1 = vld [vmem:[%s828_s0] sm:$0xff]  ;;  %v17_v3 = vld [vmem:[%s828_s0 + $0x8] sm:$0xff]  ;;  %679 = vset.pattern.permute.xlu0 %v683_v37  ;;  %v684_v49 = vmov 4   ;;  %vm630_vm8 = vcmask 7168   ;;  %vm425_vm11 = vcmask 23552   ;;  %vm594_vm12 = vcmask 122880  }
   0x2   :  { %v18_v2 = vld [vmem:[%s829_s1] sm:$0xff]  ;;  %v722_v4 = vand.u32 127, %v26_v0  ;;  %v27_v5 = vshrl.u32 %v26_v0, 7  ;;  %v19_v7 = vld [vmem:[%s829_s1 + $0x8] sm:$0xff]  ;;  %680 = vset.pattern.permute.xlu1 %v684_v49 }
   0x3   :  { %v20_v6 = vsub.f32 %v16_v1, %v18_v2  ;;  %v21_v8 = vsub.f32 %v17_v3, %v19_v7  ;;  %v770_v38 = vld [vmem:[%s830_s2 + $0x8] sm:$0xff]  ;;  %v779_v45 = vld [vmem:[%s830_s2] sm:$0xff]  ;;  %s685_s2 = smov 124  }
   0x4   :  { %vm121_vm1 = vcmp.eq.s32.totalorder %v722_v4, 2  ;;  %v30_v9 = vadd.s32 24, %v27_v5  ;;  %vm90_vm2 = vcmp.eq.s32.totalorder %v722_v4, 1  ;;  %vm65_vm3 = vcmp.eq.s32.totalorder %v722_v4, 0  ;;  %624 = vrot.lane.b32.xlu2 %v779_v45, %s685_s2 }
   0x5   :  { %v662_v11 = vsel %vm121_vm1, 1.0, %v682_v10  ;;  %v659_v12 = vsel %vm90_vm2, 1.0, %v682_v10  ;;  %v657_v13 = vsel %vm65_vm3, 1.0, %v682_v10  ;;  %v22_v14 = vmul.f32 %v20_v6, %v20_v6 }
   0x6   :  { %v144_v15 = vmul.f32 0.05, %v662_v11  ;;  %vm50_vm4 = vcmp.lt.s32.totalorder %v30_v9, 28  ;;  %vm62_vm5 = vcmp.ge.s32.totalorder %v30_v9, 28  ;;  %v111_v16 = vmul.f32 0.083333336, %v659_v12 }
   0x7   :  { %vm94_vm6 = vmand %vm90_vm2, %vm50_vm4  ;;  %v84_v17 = vmul.f32 0.0625, %v657_v13  ;;  %v154_v18 = vsel %vm152_vm0, %v22_v14, 0  ;;  %v23_v19 = vmul.f32 %v21_v8, %v21_v8  ;;  %v408_v44 = vmul.f32 %v770_v38, %v770_v38 }
   0x8   :  { %v742_v20 = vand.u32 4294901760, %v144_v15  ;;  %v660_v21 = vsel %vm94_vm6, 1.0, %v682_v10  ;;  %vm125_vm7 = vmand %vm121_vm1, %vm62_vm5  ;;  %v747_v22 = vand.u32 4294901760, %v111_v16  ;;  %v749_v23 = vand.u32 4294901760, %v154_v18 }
   0x9   :  { %v112_v24 = vmul.f32 0.083333336, %v660_v21  ;;  %v661_v25 = vsel %vm125_vm7, 1.0, %v682_v10  ;;  %v752_v26 = vand.u32 4294901760, %v84_v17  ;;  %v157_v27 = vsel %vm152_vm0, %v23_v19, 0  ;;  %416 = vperm.xlu0 %679, %v408_v44  }
   0xa   :  { %170 = vmatpush.msra.mxu0 %v742_v20  ;;  %v143_v28 = vmul.f32 0.05, %v661_v25  ;;  %v209_v29 = vsub.f32 %v144_v15, %v742_v20  ;;  %303 = vmatpush.msra.mxu3 %v742_v20  ;;  %v759_v30 = vsub.f32 %v111_v16, %v747_v22  ;;  %v182_v31 = vsub.f32 %v154_v18, %v749_v23 }
   0xb   :  { %v762_v32 = vand.u32 4294901760, %v157_v27  ;;  %v233_v36 = vsub.f32 %v84_v17, %v752_v26  ;;  %v407_v52 = vmul.f32 %v779_v45, %v779_v45  ;;  %vm401_vm9 = vcmp.eq.f32.partialorder %v779_v45, 0.0 }
   0xc   :  { %172 = vmatpush.msra.mxu0 %v742_v20  ;;  %v149_v33 = vadd.f32 %v143_v28, %v112_v24  ;;  %265 = vmatpush.msra.mxu2 %v209_v29  ;;  %v210_v34 = vand.u32 4294901760, %v209_v29  ;;  %v183_v35 = vand.u32 4294901760, %v182_v31  ;;  %v228_v41 = vand.u32 4294901760, %v759_v30 }
   0xd   :  { %305 = vmatpush.msra.mxu3 %v742_v20  ;;  %v190_v43 = vsub.f32 %v157_v27, %v762_v32  ;;  %v234_v48 = vand.u32 4294901760, %v233_v36  ;;  %599 = vperm.xlu1 %680, %v407_v52   ;;  %v664_v14 = vsel %vm401_vm9, 1.0, %v682_v10  ;;  %vm402_vm10 = vcmp.eq.f32.partialorder %v770_v38, 0.0 }
   0xe   :  { %v173_v39 = vand.u32 4294901760, %v149_v33  ;;  %268 = vmatpush.msra.mxu2 %v209_v29  ;;  %v211_v40 = vsub.f32 %v209_v29, %v210_v34  ;;  %v184_v42 = vsub.f32 %v182_v31, %v183_v35  ;;  %v229_v51 = vsub.f32 %v759_v30, %v228_v41  ;;  %626 = vrot.lane.b32.xlu2 %v770_v38, %s685_s2 }
   0xf   :  { %v191_v54 = vand.u32 4294901760, %v190_v43  ;;  %v235_v56 = vsub.f32 %v233_v36, %v234_v48  ;;  %v665_v24 = vsel %vm402_vm10, 1.0, %v682_v10  ;;  %v597_v37 = vsub.f32 1.0, %v770_v38 }
  0x10   :  { %174 = vmatpush.msra.mxu0 %v173_v39  ;;  %v212_v46 = vand.u32 4294901760, %v211_v40  ;;  %v221_v47 = vsub.f32 %v149_v33, %v173_v39  ;;  %307 = vmatpush.msra.mxu3 %v173_v39  ;;  %v185_v53 = vand.u32 4294901760, %v184_v42  ;;  %v230_v58 = vand.u32 4294901760, %v229_v51 }
  0x11   :  { %v192_v59 = vsub.f32 %v190_v43, %v191_v54  ;;  %v236_v60 = vand.u32 4294901760, %v235_v56  ;;  %411 = vperm.xlu0 %679, %v407_v52   ;;  %v686_v33 = vmov 0  }
  0x12   :  { %176 = vmatpush.msra.mxu0 %v747_v22  ;;  %213 = vmatpush.msra.mxu1 %v212_v46  ;;  %v222_v50 = vand.u32 4294901760, %v221_v47 }
  0x13   :  { %271 = vmatpush.msra.mxu2 %v221_v47  ;;  %309 = vmatpush.msra.mxu3 %v747_v22  ;;  %v193_v61 = vand.u32 4294901760, %v192_v59 }
  0x14   :  { %178 = vmatpush.msra.mxu0 %v752_v26  ;;  %219 = vmatpush.msra.mxu1 %v212_v46  ;;  %v223_v55 = vsub.f32 %v221_v47, %v222_v50 }
  0x15   :  { %274 = vmatpush.msra.mxu2 %v759_v30  ;;  %311 = vmatpush.msra.mxu3 %v752_v26 }
  0x16   :  { %180 = vmatpush.msra.mxu0 %v752_v26  ;;  %v224_v57 = vand.u32 4294901760, %v223_v55  ;;  %603 = vperm.xlu1 %680, %v408_v44  }
  0x17   :  { %186 = vmatmul.f32.vlgmr.msra.gmra.mxu0 %v185_v53  ;;  %277 = vmatpush.msra.mxu2 %v233_v36 }
  0x18   :  { %225 = vmatpush.msra.mxu1 %v224_v57  ;;  %313 = vmatpush.msra.mxu3 %v752_v26 }
  0x19   :  { %280 = vmatpush.msra.mxu2 %v233_v36  ;;  %340 = vmatpush.msrb.mxu0 %v210_v34 }
  0x1a   :  { %231 = vmatpush.msra.mxu1 %v230_v58  ;;  %283 = vmatmul.f32.vlgmr.msra.gmra.mxu2 %v182_v31 }
  0x1b   :  { %317 = vmatmul.f32.vlgmr.msra.gmra.mxu3 %v183_v35  ;;  %344 = vmatpush.msrb.mxu0 %v210_v34  ;;  %v427_v34 = vsel %vm425_vm11, 1.0, %v686_v33 }
  0x1c   :  { %237 = vmatpush.msra.mxu1 %v236_v60  ;;  %681 = vset.pattern.permute.xlu0 %v684_v49  ;;  %v454_v42 = vsub.f32 %v427_v34, %v427_v34 }
  0x1d   :  { %348 = vmatpush.msrb.mxu0 %v222_v50 }
  0x1e   :  { %243 = vmatpush.msra.mxu1 %v236_v60  ;;  %v455_v50 = vand.u32 4294901760, %v454_v42 }
  0x1f   :  { %194 = vmatmul.f32.gmra.mxu0 %v193_v61  ;;  %245 = vmatmul.f32.vlgmr.msra.gmra.mxu1 %v749_v23 }
  0x20   :  { %381 = vmatpush.msrb.mxu1 %v742_v20  ;;  %352 = vmatpush.msrb.mxu0 %v228_v41  ;;  %v456_v56 = vsub.f32 %v454_v42, %v455_v50 }
  0x22   :  { %383 = vmatpush.msrb.mxu1 %v742_v20  ;;  %288 = vmatmul.f32.gmra.mxu2 %v190_v43  ;;  %v457_v60 = vand.u32 4294901760, %v456_v56 }
  0x23   :  { %356 = vmatpush.msrb.mxu0 %v234_v48  ;;  %323 = vmatmul.f32.gmra.mxu3 %v191_v54 }
  0x24   :  { %385 = vmatpush.msrb.mxu1 %v173_v39 }
  0x25   :  { %360 = vmatpush.msrb.mxu0 %v234_v48 }
  0x26   :  { %387 = vmatpush.msrb.mxu1 %v747_v22 }
  0x27   :  { %249 = vmatmul.f32.gmra.mxu1 %v762_v32  ;;  %362 = vmatmul.f32.vlgmr.msrb.gmra.mxu0 %v749_v23 }
  0x28   :  { %389 = vmatpush.msrb.mxu1 %v752_v26 }
  0x2a   :  { %391 = vmatpush.msrb.mxu1 %v752_v26  ;;  %v596_v26 = vsub.f32 1.0, %v779_v45 }
  0x2f   :  { %366 = vmatmul.f32.gmra.mxu0 %v762_v32  ;;  %393 = vmatmul.f32.vlgmr.msrb.gmra.mxu1 %v749_v23 }
  0x37   :  { %397 = vmatmul.f32.gmra.mxu1 %v762_v32 }
  0x5e   :  { %v625_v62 = vpop.permute.xlu2 %624 }
  0x5f   :  { %v631_v63 = vsel %vm630_vm8, %v625_v62, 0.0 }
  0x68   :  { %v627_v0 = vpop.permute.xlu2 %626 }
  0x69   :  { %v632_v1 = vsel %vm630_vm8, %v627_v0, 0.0  ;;  %v687_v0 = vmov 1.0  }
  0x6a   :  { %v633_v2 = vadd.f32 %v632_v1, %v631_v63 }
  0x6c   :  { %634 = vadd.xlane.f32.xlu1 %v633_v2 }
  0x7b   :  { %v417_v5 = vpop.permute.xlu0 %416 }
  0x7c   :  { %v420_v30 = vmul.f32 %v665_v24, %v417_v5 }
  0x7e   :  { %v422_v40 = vmul.f32 0.33333334, %v420_v30 }
  0x7f   :  { %v600_v18 = vpop.permute.xlu1 %599 }
  0x80   :  { %v606_v35 = vmul.f32 %v600_v18, %v596_v26 }
  0x83   :  { %v412_v11 = vpop.permute.xlu0 %411 }
  0x84   :  { %v419_v17 = vmul.f32 %v664_v14, %v412_v11 }
  0x86   :  { %v421_v23 = vmul.f32 0.33333334, %v419_v17 }
  0x88   :  { %v604_v39 = vpop.permute.xlu1 %603 }
  0x89   :  { %v607_v44 = vmul.f32 %v604_v39, %v597_v37 }
  0x94   :  { %v187_v3 = vpop.f32.mrf.mxu0 }
  0x9c   :  { %v195_v6 = vpop.f32.mrf.mxu0  ;;  %v246_v7 = vpop.f32.mrf.mxu1 }
  0x9d   :  { %v284_v8 = vpop.f32.mrf.mxu2  ;;  %v247_v9 = vadd.f32 %v246_v7, %v187_v3 }
  0x9e   :  { %v318_v12 = vpop.f32.mrf.mxu3 }
  0x9f   :  { %v285_v15 = vadd.f32 %v284_v8, %v247_v9 }
  0xa1   :  { %v319_v19 = vadd.f32 %v318_v12, %v285_v15 }
  0xa4   :  { %v250_v13 = vpop.f32.mrf.mxu1  ;;  %v363_v16 = vpop.f32.mrf.mxu0 }
  0xa5   :  { %v251_v20 = vadd.f32 %v250_v13, %v195_v6  ;;  %v289_v21 = vpop.f32.mrf.mxu2  ;;  %v364_v22 = vadd.f32 %v363_v16, %v319_v19 }
  0xa6   :  { %v324_v29 = vpop.f32.mrf.mxu3 }
  0xa7   :  { %v290_v27 = vadd.f32 %v289_v21, %v251_v20 }
  0xa9   :  { %v325_v36 = vadd.f32 %v324_v29, %v290_v27 }
  0xac   :  { %v394_v25 = vpop.f32.mrf.mxu1  ;;  %v367_v32 = vpop.f32.mrf.mxu0 }
  0xad   :  { %v395_v28 = vadd.f32 %v394_v25, %v364_v22  ;;  %v368_v10 = vadd.f32 %v367_v32, %v325_v36 }
  0xaf   :  { %v423_v31 = vmul.f32 %v421_v23, %v395_v28  ;;  %v608_v45 = vmul.f32 %v606_v35, %v395_v28 }
  0xb1   :  { %v430_v41 = vsel %vm425_vm11, %v423_v31, 0  ;;  %v610_v52 = vsel %vm425_vm11, %v608_v45, 0.0 }
  0xb2   :  { %v451_v47 = vand.u32 4294901760, %v430_v41 }
  0xb4   :  { %v398_v43 = vpop.f32.mrf.mxu1  ;;  %v483_v53 = vsub.f32 %v430_v41, %v451_v47 }
  0xb5   :  { %v399_v46 = vadd.f32 %v398_v43, %v368_v10 }
  0xb6   :  { %v484_v59 = vand.u32 4294901760, %v483_v53 }
  0xb7   :  { %v424_v48 = vmul.f32 %v422_v40, %v399_v46  ;;  %v609_v49 = vmul.f32 %v607_v44, %v399_v46 }
  0xb8   :  { %v485_v63 = vsub.f32 %v483_v53, %v484_v59 }
  0xb9   :  { %v433_v51 = vsel %vm425_vm11, %v424_v48, 0  ;;  %v611_v38 = vsel %vm425_vm11, %v609_v49, 0.0 }
  0xba   :  { %v449_v54 = vand.u32 4294901760, %v433_v51  ;;  %v612_v55 = vadd.f32 %v611_v38, %v610_v52  ;;  %v486_v1 = vand.u32 4294901760, %v485_v63 }
  0xbc   :  { %v477_v57 = vsub.f32 %v433_v51, %v449_v54  ;;  %613 = vadd.xlane.f32.xlu0 %v612_v55  ;;  %450 = vmatpush.xpose.msrb.mxu2 %v449_v54 }
  0xbd   :  { %586 = vmatpush.xpose.msra.mxu1 %v449_v54 }
  0xbe   :  { %v478_v58 = vand.u32 4294901760, %v477_v57 }
  0xc0   :  { %452 = vmatpush.xpose.msrb.mxu2 %v451_v47  ;;  %561 = vmatpush.xpose.msra.mxu0 %v478_v58  ;;  %v479_v61 = vsub.f32 %v477_v57, %v478_v58 }
  0xc1   :  { %588 = vmatpush.xpose.msra.mxu1 %v451_v47 }
  0xc2   :  { %v480_v62 = vand.u32 4294901760, %v479_v61 }
  0xc3   :  { %458 = vmatmul.f32.vlgmr.msrb.gmra.mxu2 %v457_v60 }
  0xc4   :  { %509 = vmatpush.xpose.msra.mxu2 %v477_v57  ;;  %481 = vmatpush.xpose.msrb.mxu3 %v480_v62 }
  0xc5   :  { %565 = vmatpush.xpose.msra.mxu0 %v484_v59  ;;  %668 = vmatmul.msk.f32.vlgmr.msra.gmra.mxu1 %vm425_vm11, %v687_v0 }
  0xc8   :  { %512 = vmatpush.xpose.msra.mxu2 %v483_v53  ;;  %667 = vmatmul.msk.f32.vlgmr.msra.gmra.mxu0 %vm425_vm11, %v687_v0 }
  0xc9   :  { %487 = vmatpush.xpose.msrb.mxu3 %v486_v1 }
  0xcb   :  { %515 = vmatmul.f32.vlgmr.msra.gmra.mxu2 %v454_v42 }
  0xcc   :  { %666 = vmatmul.msk.f32.vlgmr.msrb.gmra.mxu3 %vm425_vm11, %v687_v0 }
  0xcd   :  { %534 = vmatpush.xpose.msra.mxu3 %v449_v54 }
  0xd1   :  { %536 = vmatpush.xpose.msra.mxu3 %v451_v47 }
  0xd4   :  { %540 = vmatmul.f32.vlgmr.msra.gmra.mxu3 %v455_v50 }
  0xdf   :  { %v635_v2 = vpop.xlane.xlu1 %634 }
  0xe0   :  { %v636_v3 = vrot.slane %v635_v2, 4 }
  0xe2   :  { %v637_v5 = vadd.f32 %v636_v3, %v635_v2 }
  0xe4   :  { %v638_v6 = vrot.slane %v637_v5, 2 }
  0xe6   :  { %v639_v11 = vadd.f32 %v638_v6, %v637_v5 }
  0xe8   :  { %v640_v14 = vrot.slane %v639_v11, 1 }
  0xea   :  { %v641_v17 = vadd.f32 %v640_v14, %v639_v11 }
 0x12f   :  { %v614_v7 = vpop.xlane.xlu0 %613 }
 0x130   :  { %v615_v8 = vrot.slane %v614_v7, 4 }
 0x132   :  { %v616_v9 = vadd.f32 %v615_v8, %v614_v7 }
 0x134   :  { %v617_v12 = vrot.slane %v616_v9, 2 }
 0x136   :  { %v618_v13 = vadd.f32 %v617_v12, %v616_v9 }
 0x138   :  { %v619_v15 = vrot.slane %v618_v13, 1 }
 0x13a   :  { %v620_v16 = vadd.f32 %v619_v15, %v618_v13 }
 0x13c   :  { %669 = vpush %v620_v16 }
 0x13d   :  { %671 = vpush %v641_v17 }
 0x142   :  { %v591_v26 = vpop.f32.mrf.mxu1 }
 0x145   :  { %v568_v24 = vpop.f32.mrf.mxu0 }
 0x146   :  { %v459_v18 = vpop.f32.mrf.mxu2 }
 0x14e   :  { %v516_v21 = vpop.f32.mrf.mxu2 }
 0x14f   :  { %v490_v19 = vpop.f32.mrf.mxu3 }
 0x150   :  { %v491_v20 = vadd.f32 %v490_v19, %v459_v18 }
 0x152   :  { %v517_v22 = vadd.f32 %v516_v21, %v491_v20 }
 0x157   :  { %v541_v23 = vpop.f32.mrf.mxu3 }
 0x158   :  { %v542_v25 = vadd.f32 %v541_v23, %v517_v22 }
 0x15a   :  { %v569_v27 = vadd.f32 %v568_v24, %v542_v25 }
 0x15c   :  { %v592_v28 = vadd.f32 %v591_v26, %v569_v27 }
 0x15e   :  { %595 = vst.msk [vmem:[%s831_s3] sm:$0x1] %vm594_vm12, %v592_v28 }
 0x16d   :  { %s670_s27 = spop %669 }
 0x16e   :  { %v643_v29 = vstv %s670_s27  ;;  %s672_s28 = spop %671 }
 0x16f   :  { %v644_v30 = vsel %vm65_vm3, %v643_v29, 0.0  ;;  %v645_v31 = vstv %s672_s28 }
 0x170   :  { %v646_v32 = vsel %vm90_vm2, %v645_v31, 0.0 }
 0x171   :  { %v647_v33 = vadd.f32 %v646_v32, %v644_v30 }
 0x173   :  { %648 = vst [vmem:[%s832_s4] sm:$0x1] %v647_v33 }

</bundles_post_ra>
